<compile_context>
chip_gen: v7x
topology: tpu7x:2x2x1
jax: 0.10.0
libtpu: 0.0.40
codegen_flags: <defaults>
</compile_context>

<pallas_src>
import jax
import jax.numpy as jnp
from jax import lax
from jax.experimental import pallas as pl
from jax.experimental.pallas import tpu as pltpu


def _rup(v, m):
    return ((v + m - 1) // m) * m


# ---------------------------------------------------------------------------
# Fused kernel (one grid step per batch tile):
#   x_ref   : (Bt, Ltot, C)        raw input windows' source (compute_dtype)
#   w_ref   : (k_max, C, NO_p)     per-tap stacked conv weights for all branches
#   b_ref   : (1, NO_p)   f32      stacked conv biases
#   lim_ref : (1, NO_p)   int32    per-channel last valid time index (= L - k)
#   fcw_ref : (NO_p, out_p)        FC weight (transposed, padded)
#   fcb_ref : (1, out_p)  f32      FC bias
#   o_ref   : (Bt, out_p) f32      output (lane-dense, padded)
# ---------------------------------------------------------------------------
def make_cnn_kernel(n_chunks, Tc, k_max, mask_from_t):
    def kernel(x_ref, w_ref, b_ref, lim_ref, fcw_ref, fcb_ref, o_ref):
        Bt, _, C = x_ref.shape
        NO_p = w_ref.shape[2]

        # Running global max-pool accumulator; ReLU output >= 0 so 0 is identity.
        feat = jnp.zeros((Bt, NO_p), jnp.float32)

        for ci in range(n_chunks):                 # static unrolled time chunks
            t0 = ci * Tc
            # Conv for time positions [t0, t0+Tc): k_max accumulating tap matmuls
            # whose windows are built in VMEM from static sublane slices
            # (no im2col materialized in HBM, no zero-padded contraction).
            conv = jnp.zeros((Bt * Tc, NO_p), jnp.float32)
            for dk in range(k_max):
                xs = x_ref[:, t0 + dk:t0 + dk + Tc, :].reshape(Bt * Tc, C)
                conv = conv + jnp.dot(xs, w_ref[dk],
                                      preferred_element_type=jnp.float32)
            conv = conv.reshape(Bt, Tc, NO_p) + b_ref[...]
            act = jnp.maximum(conv, 0.0)           # ReLU

            # Per-branch time validity, fused into the max-pool (0 is a safe
            # "-inf" because ReLU output >= 0).  Only chunks that can touch an
            # invalid position pay for the mask.
            if t0 + Tc > mask_from_t:
                t_idx = t0 + lax.broadcasted_iota(jnp.int32, (Tc, NO_p), 0)
                act = jnp.where((t_idx <= lim_ref[...])[None], act, 0.0)

            feat = jnp.maximum(feat, jnp.max(act, axis=1))   # (Bt, NO_p)

        # Final Linear layer (branch concat is implicit in the channel packing).
        out = jnp.dot(feat.astype(fcw_ref.dtype), fcw_ref[...],
                      preferred_element_type=jnp.float32) + fcb_ref[...]
        o_ref[...] = out.astype(o_ref.dtype)

    return kernel


def cnn_forward_pallas(x_ncl, conv_ws, conv_bs, fc_w, fc_b, kernel_sizes,
                       compute_dtype=jnp.float32):
    """x_ncl: (B, C, L) float32, PyTorch NCL convention."""
    B, C, L = x_ncl.shape
    n_k = len(kernel_sizes)
    O = conv_ws[0].shape[0]
    out_size = fc_w.shape[0]
    k_min, k_max = min(kernel_sizes), max(kernel_sizes)
    assert L >= k_max, "every conv branch needs at least one valid window (L >= k)"

    # ---- time chunking / padding --------------------------------------------
    Lout = L - k_min + 1                       # widest conv output length
    Tc = min(32, _rup(Lout, 8))                # sublane-aligned chunk
    while Lout > 16 * Tc:                      # bound the static unroll
        Tc *= 2
    Lout_p = _rup(Lout, Tc)
    n_chunks = Lout_p // Tc
    Ltot = _rup(Lout_p + k_max - 1, 8)         # time extent the kernel reads

    NO = n_k * O
    NO_p = _rup(NO, 128)                       # lane-dense fused channel dim
    out_p = _rup(out_size, 128)                # lane-dense output dim
    bytes_el = jnp.dtype(compute_dtype).itemsize

    # ---- VMEM-aware batch tiling (double-buffer + intermediates, per chip) ---
    try:
        vmem_cap = int(pltpu.get_tpu_info().vmem_capacity_bytes)
        if vmem_cap < (16 << 20):
            vmem_cap = 64 << 20
    except Exception:
        vmem_cap = 64 << 20                    # conservative (v7x per-core size)
    budget = min(24 << 20, vmem_cap // 3)

    x_row_vmem = Ltot * 128 * bytes_el         # x block: C lane-padded in VMEM
    inter_row = 3 * Tc * NO_p * 4 + NO_p * 4   # conv/act chunk temps + feat acc
    weights_vmem = (2 * (k_max * C * NO_p + NO_p * out_p) * bytes_el
                    + 2 * (2 * NO_p + out_p) * 4)
    avail = max(budget - weights_vmem, 1 << 20)
    Bt = int(max(1, min(B, avail // (2 * x_row_vmem + inter_row))))
    if B >= 16:                                # >=2 grid steps -> both v7x TCs busy
        Bt = min(Bt, _rup((B + 1) // 2, 8))
    if Bt < B:
        Bt = max(8, (Bt // 8) * 8)             # output block needs 8-row alignment
    Bp = _rup(B, Bt)

    # ---- input: NCL -> (B, Ltot, C); transpose + zero time-pad only ----------
    x_blc = jnp.transpose(x_ncl, (0, 2, 1)).astype(compute_dtype)
    x_blc = jnp.pad(x_blc, ((0, Bp - B), (0, Ltot - L), (0, 0)))

    # ---- parameter packing ----------------------------------------------------
    # Conv weights (O, C, k) -> W_all[dk, c, branch*O + o]; columns are the fused
    # (padded to 128) channel axis shared with bias / lim / FC rows.
    W_all = jnp.zeros((k_max, C, NO_p), compute_dtype)
    b_all = jnp.zeros((1, NO_p), jnp.float32)
    lim = jnp.full((1, NO_p), -1, jnp.int32)   # pad channels: always invalid
    for i, (k, w, b) in enumerate(zip(kernel_sizes, conv_ws, conv_bs)):
        w_t = jnp.transpose(w, (2, 1, 0)).astype(compute_dtype)   # (k, C, O)
        W_all = W_all.at[:k, :, i * O:(i + 1) * O].set(w_t)
        b_all = b_all.at[0, i * O:(i + 1) * O].set(b)
        lim = lim.at[0, i * O:(i + 1) * O].set(L - k)

    fcw_all = jnp.zeros((NO_p, out_p), compute_dtype)
    fcw_all = fcw_all.at[:NO, :out_size].set(fc_w.T.astype(compute_dtype))
    fcb_all = jnp.zeros((1, out_p), jnp.float32)
    fcb_all = fcb_all.at[0, :out_size].set(fc_b)

    mask_from_t = L - k_max + 1                # first possibly-invalid position
    kernel = make_cnn_kernel(n_chunks=n_chunks, Tc=Tc, k_max=k_max,
                             mask_from_t=mask_from_t)

    vmem_need = Bt * (2 * x_row_vmem + inter_row) + weights_vmem + (2 << 20)
    vmem_limit = int(min(max(2 * vmem_need, 32 << 20), vmem_cap * 3 // 4))

    # ---- pallas_call -----------------------------------------------------------
    grid = (Bp // Bt,)
    out_full = pl.pallas_call(
        kernel,
        out_shape=jax.ShapeDtypeStruct((Bp, out_p), jnp.float32),
        grid_spec=pl.GridSpec(
            grid=grid,
            in_specs=[
                pl.BlockSpec((Bt, Ltot, C), lambda i: (i, 0, 0)),      # x
                pl.BlockSpec((k_max, C, NO_p), lambda i: (0, 0, 0)),   # conv W
                pl.BlockSpec((1, NO_p), lambda i: (0, 0)),             # conv b
                pl.BlockSpec((1, NO_p), lambda i: (0, 0)),             # lim
                pl.BlockSpec((NO_p, out_p), lambda i: (0, 0)),         # fc W
                pl.BlockSpec((1, out_p), lambda i: (0, 0)),            # fc b
            ],
            out_specs=pl.BlockSpec((Bt, out_p), lambda i: (i, 0)),
        ),
        compiler_params=pltpu.CompilerParams(
            dimension_semantics=("parallel",),
            vmem_limit_bytes=vmem_limit),
    )(x_blc, W_all, b_all, lim, fcw_all, fcb_all)

    return out_full[:B, :out_size]


# ---------------------------------------------------------------------------
# Pure-JAX reference (exact-window conv) for validation.
# ---------------------------------------------------------------------------
def cnn_forward_ref(x_ncl, conv_ws, conv_bs, fc_w, fc_b, kernel_sizes):
    B, C, L = x_ncl.shape
    feats = []
    for k, w, b in zip(kernel_sizes, conv_ws, conv_bs):
        Lout_k = L - k + 1
        conv = jnp.zeros((B, w.shape[0], Lout_k), jnp.float32)
        for dk in range(k):
            conv = conv + jnp.einsum(
                "oc,bcl->bol", w[:, :, dk], x_ncl[:, :, dk:dk + Lout_k])
        conv = conv + b[None, :, None]
        feats.append(jnp.max(jax.nn.relu(conv), axis=-1))
    feat = jnp.concatenate(feats, axis=1)
    return feat @ fc_w.T + fc_b[None, :]


if __name__ == "__main__":
    # Small shapes consistent with the module structure.
    B, C, L = 2, 4, 64
    O = 16                        # out_channels per conv branch
    kernel_sizes = [5, 6, 7, 8]   # module default is 5..15; shortened small demo
    out_size = 64                 # fc output size

    key = jax.random.PRNGKey(0)
    keys = jax.random.split(key, 3 + 2 * len(kernel_sizes))

    x = jax.random.normal(keys[0], (B, C, L), jnp.float32)
    conv_ws, conv_bs = [], []
    for i, k in enumerate(kernel_sizes):
        conv_ws.append(0.1 * jax.random.normal(keys[1 + 2 * i], (O, C, k), jnp.float32))
        conv_bs.append(0.1 * jax.random.normal(keys[2 + 2 * i], (O,), jnp.float32))
    fc_w = 0.05 * jax.random.normal(keys[-2], (out_size, O * len(kernel_sizes)), jnp.float32)
    fc_b = 0.05 * jax.random.normal(keys[-1], (out_size,), jnp.float32)

    ref = cnn_forward_ref(x, conv_ws, conv_bs, fc_w, fc_b, kernel_sizes)

    # f32 path (tight tolerance).
    out = cnn_forward_pallas(x, conv_ws, conv_bs, fc_w, fc_b, kernel_sizes)
    out = jax.block_until_ready(out)
    assert out.shape == (B, out_size), out.shape
    assert jnp.allclose(out, ref, atol=1e-4, rtol=1e-4), \
        float(jnp.max(jnp.abs(out - ref)))

    # bf16 input path (recommended on v6e/v7x: halves HBM traffic, f32 accumulate).
    out_bf16 = cnn_forward_pallas(x, conv_ws, conv_bs, fc_w, fc_b, kernel_sizes,
                                  compute_dtype=jnp.bfloat16)
    out_bf16 = jax.block_until_ready(out_bf16)
    assert jnp.allclose(out_bf16, ref, atol=1e-1, rtol=1e-1), \
        float(jnp.max(jnp.abs(out_bf16 - ref)))

    print("KERNEL_OK")
</pallas_src>

<mosaic_0001>
module attributes {stable_mosaic.version = 11 : i64} {
  func.func @kernel(%arg0: i32, %arg1: memref<2x72x4xf32, #tpu.memory_space<vmem>>, %arg2: memref<8x4x128xf32, #tpu.memory_space<vmem>>, %arg3: memref<1x128xf32, #tpu.memory_space<vmem>>, %arg4: memref<1x128xi32, #tpu.memory_space<vmem>>, %arg5: memref<128x128xf32, #tpu.memory_space<vmem>>, %arg6: memref<1x128xf32, #tpu.memory_space<vmem>>, %arg7: memref<2x128xf32, #tpu.memory_space<vmem>>) attributes {dimension_semantics = [#tpu.dimension_semantics<parallel>], iteration_bounds = array<i64: 1>, scalar_prefetch = 0 : i64, scratch_operands = 0 : i64, tpu.core_type = #tpu.core_type<tc>, window_params = [{transform_indices = @transform_0, window_bounds = array<i64: 2, 72, 4>}, {pipeline_mode = #tpu.pipeline_mode<synchronous>, transform_indices = @transform_1, window_bounds = array<i64: 8, 4, 128>}, {pipeline_mode = #tpu.pipeline_mode<synchronous>, transform_indices = @transform_2, window_bounds = array<i64: 1, 128>}, {pipeline_mode = #tpu.pipeline_mode<synchronous>, transform_indices = @transform_3, window_bounds = array<i64: 1, 128>}, {pipeline_mode = #tpu.pipeline_mode<synchronous>, transform_indices = @transform_4, window_bounds = array<i64: 128, 128>}, {pipeline_mode = #tpu.pipeline_mode<synchronous>, transform_indices = @transform_5, window_bounds = array<i64: 1, 128>}, {transform_indices = @transform_6, window_bounds = array<i64: 2, 128>}]} {
    %cst = arith.constant 0.000000e+00 : f32
    %0 = vector.broadcast %cst : f32 to vector<2x128xf32>
    %cst_0 = arith.constant 0.000000e+00 : f32
    %1 = vector.broadcast %cst_0 : f32 to vector<64x128xf32>
    %c0 = arith.constant 0 : index
    %c0_1 = arith.constant 0 : index
    %c0_2 = arith.constant 0 : index
    %2 = vector.load %arg1[%c0, %c0_1, %c0_2] : memref<2x72x4xf32, #tpu.memory_space<vmem>>, vector<2x32x4xf32>
    %3 = vector.shape_cast %2 : vector<2x32x4xf32> to vector<64x4xf32>
    %c0_3 = arith.constant 0 : index
    %c0_4 = arith.constant 0 : index
    %c0_5 = arith.constant 0 : index
    %4 = vector.load %arg2[%c0_3, %c0_4, %c0_5] : memref<8x4x128xf32, #tpu.memory_space<vmem>>, vector<1x4x128xf32>
    %5 = vector.shape_cast %4 : vector<1x4x128xf32> to vector<4x128xf32>
    %cst_6 = arith.constant dense<0.000000e+00> : vector<64x128xf32>
    %6 = tpu.matmul %3, %5, %cst_6 {dimension_numbers = #tpu.dot_dimension_numbers<[1], [0], [0], [1], [0, 0, 1, 1], [], []>} : vector<64x4xf32>, vector<4x128xf32>, vector<64x128xf32> -> vector<64x128xf32>
    %7 = arith.addf %1, %6 : vector<64x128xf32>
    %c0_7 = arith.constant 0 : index
    %c1 = arith.constant 1 : index
    %c0_8 = arith.constant 0 : index
    %8 = vector.load %arg1[%c0_7, %c1, %c0_8] : memref<2x72x4xf32, #tpu.memory_space<vmem>>, vector<2x32x4xf32>
    %9 = vector.shape_cast %8 : vector<2x32x4xf32> to vector<64x4xf32>
    %c1_9 = arith.constant 1 : index
    %c0_10 = arith.constant 0 : index
    %c0_11 = arith.constant 0 : index
    %10 = vector.load %arg2[%c1_9, %c0_10, %c0_11] : memref<8x4x128xf32, #tpu.memory_space<vmem>>, vector<1x4x128xf32>
    %11 = vector.shape_cast %10 : vector<1x4x128xf32> to vector<4x128xf32>
    %cst_12 = arith.constant dense<0.000000e+00> : vector<64x128xf32>
    %12 = tpu.matmul %9, %11, %cst_12 {dimension_numbers = #tpu.dot_dimension_numbers<[1], [0], [0], [1], [0, 0, 1, 1], [], []>} : vector<64x4xf32>, vector<4x128xf32>, vector<64x128xf32> -> vector<64x128xf32>
    %13 = arith.addf %7, %12 : vector<64x128xf32>
    %c0_13 = arith.constant 0 : index
    %c2 = arith.constant 2 : index
    %c0_14 = arith.constant 0 : index
    %14 = vector.load %arg1[%c0_13, %c2, %c0_14] : memref<2x72x4xf32, #tpu.memory_space<vmem>>, vector<2x32x4xf32>
    %15 = vector.shape_cast %14 : vector<2x32x4xf32> to vector<64x4xf32>
    %c2_15 = arith.constant 2 : index
    %c0_16 = arith.constant 0 : index
    %c0_17 = arith.constant 0 : index
    %16 = vector.load %arg2[%c2_15, %c0_16, %c0_17] : memref<8x4x128xf32, #tpu.memory_space<vmem>>, vector<1x4x128xf32>
    %17 = vector.shape_cast %16 : vector<1x4x128xf32> to vector<4x128xf32>
    %cst_18 = arith.constant dense<0.000000e+00> : vector<64x128xf32>
    %18 = tpu.matmul %15, %17, %cst_18 {dimension_numbers = #tpu.dot_dimension_numbers<[1], [0], [0], [1], [0, 0, 1, 1], [], []>} : vector<64x4xf32>, vector<4x128xf32>, vector<64x128xf32> -> vector<64x128xf32>
    %19 = arith.addf %13, %18 : vector<64x128xf32>
    %c0_19 = arith.constant 0 : index
    %c3 = arith.constant 3 : index
    %c0_20 = arith.constant 0 : index
    %20 = vector.load %arg1[%c0_19, %c3, %c0_20] : memref<2x72x4xf32, #tpu.memory_space<vmem>>, vector<2x32x4xf32>
    %21 = vector.shape_cast %20 : vector<2x32x4xf32> to vector<64x4xf32>
    %c3_21 = arith.constant 3 : index
    %c0_22 = arith.constant 0 : index
    %c0_23 = arith.constant 0 : index
    %22 = vector.load %arg2[%c3_21, %c0_22, %c0_23] : memref<8x4x128xf32, #tpu.memory_space<vmem>>, vector<1x4x128xf32>
    %23 = vector.shape_cast %22 : vector<1x4x128xf32> to vector<4x128xf32>
    %cst_24 = arith.constant dense<0.000000e+00> : vector<64x128xf32>
    %24 = tpu.matmul %21, %23, %cst_24 {dimension_numbers = #tpu.dot_dimension_numbers<[1], [0], [0], [1], [0, 0, 1, 1], [], []>} : vector<64x4xf32>, vector<4x128xf32>, vector<64x128xf32> -> vector<64x128xf32>
    %25 = arith.addf %19, %24 : vector<64x128xf32>
    %c0_25 = arith.constant 0 : index
    %c4 = arith.constant 4 : index
    %c0_26 = arith.constant 0 : index
    %26 = vector.load %arg1[%c0_25, %c4, %c0_26] : memref<2x72x4xf32, #tpu.memory_space<vmem>>, vector<2x32x4xf32>
    %27 = vector.shape_cast %26 : vector<2x32x4xf32> to vector<64x4xf32>
    %c4_27 = arith.constant 4 : index
    %c0_28 = arith.constant 0 : index
    %c0_29 = arith.constant 0 : index
    %28 = vector.load %arg2[%c4_27, %c0_28, %c0_29] : memref<8x4x128xf32, #tpu.memory_space<vmem>>, vector<1x4x128xf32>
    %29 = vector.shape_cast %28 : vector<1x4x128xf32> to vector<4x128xf32>
    %cst_30 = arith.constant dense<0.000000e+00> : vector<64x128xf32>
    %30 = tpu.matmul %27, %29, %cst_30 {dimension_numbers = #tpu.dot_dimension_numbers<[1], [0], [0], [1], [0, 0, 1, 1], [], []>} : vector<64x4xf32>, vector<4x128xf32>, vector<64x128xf32> -> vector<64x128xf32>
    %31 = arith.addf %25, %30 : vector<64x128xf32>
    %c0_31 = arith.constant 0 : index
    %c5 = arith.constant 5 : index
    %c0_32 = arith.constant 0 : index
    %32 = vector.load %arg1[%c0_31, %c5, %c0_32] : memref<2x72x4xf32, #tpu.memory_space<vmem>>, vector<2x32x4xf32>
    %33 = vector.shape_cast %32 : vector<2x32x4xf32> to vector<64x4xf32>
    %c5_33 = arith.constant 5 : index
    %c0_34 = arith.constant 0 : index
    %c0_35 = arith.constant 0 : index
    %34 = vector.load %arg2[%c5_33, %c0_34, %c0_35] : memref<8x4x128xf32, #tpu.memory_space<vmem>>, vector<1x4x128xf32>
    %35 = vector.shape_cast %34 : vector<1x4x128xf32> to vector<4x128xf32>
    %cst_36 = arith.constant dense<0.000000e+00> : vector<64x128xf32>
    %36 = tpu.matmul %33, %35, %cst_36 {dimension_numbers = #tpu.dot_dimension_numbers<[1], [0], [0], [1], [0, 0, 1, 1], [], []>} : vector<64x4xf32>, vector<4x128xf32>, vector<64x128xf32> -> vector<64x128xf32>
    %37 = arith.addf %31, %36 : vector<64x128xf32>
    %c0_37 = arith.constant 0 : index
    %c6 = arith.constant 6 : index
    %c0_38 = arith.constant 0 : index
    %38 = vector.load %arg1[%c0_37, %c6, %c0_38] : memref<2x72x4xf32, #tpu.memory_space<vmem>>, vector<2x32x4xf32>
    %39 = vector.shape_cast %38 : vector<2x32x4xf32> to vector<64x4xf32>
    %c6_39 = arith.constant 6 : index
    %c0_40 = arith.constant 0 : index
    %c0_41 = arith.constant 0 : index
    %40 = vector.load %arg2[%c6_39, %c0_40, %c0_41] : memref<8x4x128xf32, #tpu.memory_space<vmem>>, vector<1x4x128xf32>
    %41 = vector.shape_cast %40 : vector<1x4x128xf32> to vector<4x128xf32>
    %cst_42 = arith.constant dense<0.000000e+00> : vector<64x128xf32>
    %42 = tpu.matmul %39, %41, %cst_42 {dimension_numbers = #tpu.dot_dimension_numbers<[1], [0], [0], [1], [0, 0, 1, 1], [], []>} : vector<64x4xf32>, vector<4x128xf32>, vector<64x128xf32> -> vector<64x128xf32>
    %43 = arith.addf %37, %42 : vector<64x128xf32>
    %c0_43 = arith.constant 0 : index
    %c7 = arith.constant 7 : index
    %c0_44 = arith.constant 0 : index
    %44 = vector.load %arg1[%c0_43, %c7, %c0_44] : memref<2x72x4xf32, #tpu.memory_space<vmem>>, vector<2x32x4xf32>
    %45 = vector.shape_cast %44 : vector<2x32x4xf32> to vector<64x4xf32>
    %c7_45 = arith.constant 7 : index
    %c0_46 = arith.constant 0 : index
    %c0_47 = arith.constant 0 : index
    %46 = vector.load %arg2[%c7_45, %c0_46, %c0_47] : memref<8x4x128xf32, #tpu.memory_space<vmem>>, vector<1x4x128xf32>
    %47 = vector.shape_cast %46 : vector<1x4x128xf32> to vector<4x128xf32>
    %cst_48 = arith.constant dense<0.000000e+00> : vector<64x128xf32>
    %48 = tpu.matmul %45, %47, %cst_48 {dimension_numbers = #tpu.dot_dimension_numbers<[1], [0], [0], [1], [0, 0, 1, 1], [], []>} : vector<64x4xf32>, vector<4x128xf32>, vector<64x128xf32> -> vector<64x128xf32>
    %49 = arith.addf %43, %48 : vector<64x128xf32>
    %50 = vector.shape_cast %49 : vector<64x128xf32> to vector<2x32x128xf32>
    %c0_49 = arith.constant 0 : index
    %c0_50 = arith.constant 0 : index
    %51 = vector.load %arg3[%c0_49, %c0_50] : memref<1x128xf32, #tpu.memory_space<vmem>>, vector<1x128xf32>
    %52 = vector.shape_cast %51 : vector<1x128xf32> to vector<1x1x128xf32>
    %53 = vector.broadcast %52 : vector<1x1x128xf32> to vector<2x32x128xf32>
    %54 = arith.addf %50, %53 : vector<2x32x128xf32>
    %cst_51 = arith.constant 0.000000e+00 : f32
    %55 = vector.broadcast %cst_51 : f32 to vector<2x32x128xf32>
    %56 = arith.maximumf %54, %55 : vector<2x32x128xf32>
    %cst_52 = arith.constant dense<0xFF800000> : vector<2x128xf32>
    %57 = vector.multi_reduction <maximumf>, %56, %cst_52 [1] : vector<2x32x128xf32> to vector<2x128xf32>
    %58 = arith.maximumf %0, %57 : vector<2x128xf32>
    %cst_53 = arith.constant 0.000000e+00 : f32
    %59 = vector.broadcast %cst_53 : f32 to vector<64x128xf32>
    %c0_54 = arith.constant 0 : index
    %c32 = arith.constant 32 : index
    %c0_55 = arith.constant 0 : index
    %60 = vector.load %arg1[%c0_54, %c32, %c0_55] : memref<2x72x4xf32, #tpu.memory_space<vmem>>, vector<2x32x4xf32>
    %61 = vector.shape_cast %60 : vector<2x32x4xf32> to vector<64x4xf32>
    %c0_56 = arith.constant 0 : index
    %c0_57 = arith.constant 0 : index
    %c0_58 = arith.constant 0 : index
    %62 = vector.load %arg2[%c0_56, %c0_57, %c0_58] : memref<8x4x128xf32, #tpu.memory_space<vmem>>, vector<1x4x128xf32>
    %63 = vector.shape_cast %62 : vector<1x4x128xf32> to vector<4x128xf32>
    %cst_59 = arith.constant dense<0.000000e+00> : vector<64x128xf32>
    %64 = tpu.matmul %61, %63, %cst_59 {dimension_numbers = #tpu.dot_dimension_numbers<[1], [0], [0], [1], [0, 0, 1, 1], [], []>} : vector<64x4xf32>, vector<4x128xf32>, vector<64x128xf32> -> vector<64x128xf32>
    %65 = arith.addf %59, %64 : vector<64x128xf32>
    %c0_60 = arith.constant 0 : index
    %c33 = arith.constant 33 : index
    %c0_61 = arith.constant 0 : index
    %66 = vector.load %arg1[%c0_60, %c33, %c0_61] : memref<2x72x4xf32, #tpu.memory_space<vmem>>, vector<2x32x4xf32>
    %67 = vector.shape_cast %66 : vector<2x32x4xf32> to vector<64x4xf32>
    %c1_62 = arith.constant 1 : index
    %c0_63 = arith.constant 0 : index
    %c0_64 = arith.constant 0 : index
    %68 = vector.load %arg2[%c1_62, %c0_63, %c0_64] : memref<8x4x128xf32, #tpu.memory_space<vmem>>, vector<1x4x128xf32>
    %69 = vector.shape_cast %68 : vector<1x4x128xf32> to vector<4x128xf32>
    %cst_65 = arith.constant dense<0.000000e+00> : vector<64x128xf32>
    %70 = tpu.matmul %67, %69, %cst_65 {dimension_numbers = #tpu.dot_dimension_numbers<[1], [0], [0], [1], [0, 0, 1, 1], [], []>} : vector<64x4xf32>, vector<4x128xf32>, vector<64x128xf32> -> vector<64x128xf32>
    %71 = arith.addf %65, %70 : vector<64x128xf32>
    %c0_66 = arith.constant 0 : index
    %c34 = arith.constant 34 : index
    %c0_67 = arith.constant 0 : index
    %72 = vector.load %arg1[%c0_66, %c34, %c0_67] : memref<2x72x4xf32, #tpu.memory_space<vmem>>, vector<2x32x4xf32>
    %73 = vector.shape_cast %72 : vector<2x32x4xf32> to vector<64x4xf32>
    %c2_68 = arith.constant 2 : index
    %c0_69 = arith.constant 0 : index
    %c0_70 = arith.constant 0 : index
    %74 = vector.load %arg2[%c2_68, %c0_69, %c0_70] : memref<8x4x128xf32, #tpu.memory_space<vmem>>, vector<1x4x128xf32>
    %75 = vector.shape_cast %74 : vector<1x4x128xf32> to vector<4x128xf32>
    %cst_71 = arith.constant dense<0.000000e+00> : vector<64x128xf32>
    %76 = tpu.matmul %73, %75, %cst_71 {dimension_numbers = #tpu.dot_dimension_numbers<[1], [0], [0], [1], [0, 0, 1, 1], [], []>} : vector<64x4xf32>, vector<4x128xf32>, vector<64x128xf32> -> vector<64x128xf32>
    %77 = arith.addf %71, %76 : vector<64x128xf32>
    %c0_72 = arith.constant 0 : index
    %c35 = arith.constant 35 : index
    %c0_73 = arith.constant 0 : index
    %78 = vector.load %arg1[%c0_72, %c35, %c0_73] : memref<2x72x4xf32, #tpu.memory_space<vmem>>, vector<2x32x4xf32>
    %79 = vector.shape_cast %78 : vector<2x32x4xf32> to vector<64x4xf32>
    %c3_74 = arith.constant 3 : index
    %c0_75 = arith.constant 0 : index
    %c0_76 = arith.constant 0 : index
    %80 = vector.load %arg2[%c3_74, %c0_75, %c0_76] : memref<8x4x128xf32, #tpu.memory_space<vmem>>, vector<1x4x128xf32>
    %81 = vector.shape_cast %80 : vector<1x4x128xf32> to vector<4x128xf32>
    %cst_77 = arith.constant dense<0.000000e+00> : vector<64x128xf32>
    %82 = tpu.matmul %79, %81, %cst_77 {dimension_numbers = #tpu.dot_dimension_numbers<[1], [0], [0], [1], [0, 0, 1, 1], [], []>} : vector<64x4xf32>, vector<4x128xf32>, vector<64x128xf32> -> vector<64x128xf32>
    %83 = arith.addf %77, %82 : vector<64x128xf32>
    %c0_78 = arith.constant 0 : index
    %c36 = arith.constant 36 : index
    %c0_79 = arith.constant 0 : index
    %84 = vector.load %arg1[%c0_78, %c36, %c0_79] : memref<2x72x4xf32, #tpu.memory_space<vmem>>, vector<2x32x4xf32>
    %85 = vector.shape_cast %84 : vector<2x32x4xf32> to vector<64x4xf32>
    %c4_80 = arith.constant 4 : index
    %c0_81 = arith.constant 0 : index
    %c0_82 = arith.constant 0 : index
    %86 = vector.load %arg2[%c4_80, %c0_81, %c0_82] : memref<8x4x128xf32, #tpu.memory_space<vmem>>, vector<1x4x128xf32>
    %87 = vector.shape_cast %86 : vector<1x4x128xf32> to vector<4x128xf32>
    %cst_83 = arith.constant dense<0.000000e+00> : vector<64x128xf32>
    %88 = tpu.matmul %85, %87, %cst_83 {dimension_numbers = #tpu.dot_dimension_numbers<[1], [0], [0], [1], [0, 0, 1, 1], [], []>} : vector<64x4xf32>, vector<4x128xf32>, vector<64x128xf32> -> vector<64x128xf32>
    %89 = arith.addf %83, %88 : vector<64x128xf32>
    %c0_84 = arith.constant 0 : index
    %c37 = arith.constant 37 : index
    %c0_85 = arith.constant 0 : index
    %90 = vector.load %arg1[%c0_84, %c37, %c0_85] : memref<2x72x4xf32, #tpu.memory_space<vmem>>, vector<2x32x4xf32>
    %91 = vector.shape_cast %90 : vector<2x32x4xf32> to vector<64x4xf32>
    %c5_86 = arith.constant 5 : index
    %c0_87 = arith.constant 0 : index
    %c0_88 = arith.constant 0 : index
    %92 = vector.load %arg2[%c5_86, %c0_87, %c0_88] : memref<8x4x128xf32, #tpu.memory_space<vmem>>, vector<1x4x128xf32>
    %93 = vector.shape_cast %92 : vector<1x4x128xf32> to vector<4x128xf32>
    %cst_89 = arith.constant dense<0.000000e+00> : vector<64x128xf32>
    %94 = tpu.matmul %91, %93, %cst_89 {dimension_numbers = #tpu.dot_dimension_numbers<[1], [0], [0], [1], [0, 0, 1, 1], [], []>} : vector<64x4xf32>, vector<4x128xf32>, vector<64x128xf32> -> vector<64x128xf32>
    %95 = arith.addf %89, %94 : vector<64x128xf32>
    %c0_90 = arith.constant 0 : index
    %c38 = arith.constant 38 : index
    %c0_91 = arith.constant 0 : index
    %96 = vector.load %arg1[%c0_90, %c38, %c0_91] : memref<2x72x4xf32, #tpu.memory_space<vmem>>, vector<2x32x4xf32>
    %97 = vector.shape_cast %96 : vector<2x32x4xf32> to vector<64x4xf32>
    %c6_92 = arith.constant 6 : index
    %c0_93 = arith.constant 0 : index
    %c0_94 = arith.constant 0 : index
    %98 = vector.load %arg2[%c6_92, %c0_93, %c0_94] : memref<8x4x128xf32, #tpu.memory_space<vmem>>, vector<1x4x128xf32>
    %99 = vector.shape_cast %98 : vector<1x4x128xf32> to vector<4x128xf32>
    %cst_95 = arith.constant dense<0.000000e+00> : vector<64x128xf32>
    %100 = tpu.matmul %97, %99, %cst_95 {dimension_numbers = #tpu.dot_dimension_numbers<[1], [0], [0], [1], [0, 0, 1, 1], [], []>} : vector<64x4xf32>, vector<4x128xf32>, vector<64x128xf32> -> vector<64x128xf32>
    %101 = arith.addf %95, %100 : vector<64x128xf32>
    %c0_96 = arith.constant 0 : index
    %c39 = arith.constant 39 : index
    %c0_97 = arith.constant 0 : index
    %102 = vector.load %arg1[%c0_96, %c39, %c0_97] : memref<2x72x4xf32, #tpu.memory_space<vmem>>, vector<2x32x4xf32>
    %103 = vector.shape_cast %102 : vector<2x32x4xf32> to vector<64x4xf32>
    %c7_98 = arith.constant 7 : index
    %c0_99 = arith.constant 0 : index
    %c0_100 = arith.constant 0 : index
    %104 = vector.load %arg2[%c7_98, %c0_99, %c0_100] : memref<8x4x128xf32, #tpu.memory_space<vmem>>, vector<1x4x128xf32>
    %105 = vector.shape_cast %104 : vector<1x4x128xf32> to vector<4x128xf32>
    %cst_101 = arith.constant dense<0.000000e+00> : vector<64x128xf32>
    %106 = tpu.matmul %103, %105, %cst_101 {dimension_numbers = #tpu.dot_dimension_numbers<[1], [0], [0], [1], [0, 0, 1, 1], [], []>} : vector<64x4xf32>, vector<4x128xf32>, vector<64x128xf32> -> vector<64x128xf32>
    %107 = arith.addf %101, %106 : vector<64x128xf32>
    %108 = vector.shape_cast %107 : vector<64x128xf32> to vector<2x32x128xf32>
    %c0_102 = arith.constant 0 : index
    %c0_103 = arith.constant 0 : index
    %109 = vector.load %arg3[%c0_102, %c0_103] : memref<1x128xf32, #tpu.memory_space<vmem>>, vector<1x128xf32>
    %110 = vector.shape_cast %109 : vector<1x128xf32> to vector<1x1x128xf32>
    %111 = vector.broadcast %110 : vector<1x1x128xf32> to vector<2x32x128xf32>
    %112 = arith.addf %108, %111 : vector<2x32x128xf32>
    %cst_104 = arith.constant 0.000000e+00 : f32
    %113 = vector.broadcast %cst_104 : f32 to vector<2x32x128xf32>
    %114 = arith.maximumf %112, %113 : vector<2x32x128xf32>
    %115 = tpu.iota {dimensions = array<i32: 0>} : vector<32x128xi32>
    %c32_i32 = arith.constant 32 : i32
    %116 = vector.broadcast %c32_i32 : i32 to vector<32x128xi32>
    %117 = arith.addi %116, %115 : vector<32x128xi32>
    %c0_105 = arith.constant 0 : index
    %c0_106 = arith.constant 0 : index
    %118 = vector.load %arg4[%c0_105, %c0_106] : memref<1x128xi32, #tpu.memory_space<vmem>>, vector<1x128xi32>
    %119 = vector.broadcast %118 : vector<1x128xi32> to vector<32x128xi32>
    %120 = arith.cmpi sle, %117, %119 : vector<32x128xi32>
    %121 = vector.shape_cast %120 : vector<32x128xi1> to vector<1x32x128xi1>
    %cst_107 = arith.constant 0.000000e+00 : f32
    %122 = vector.shape_cast %121 : vector<1x32x128xi1> to vector<1x32x128xi1>
    %123 = vector.broadcast %122 : vector<1x32x128xi1> to vector<2x32x128xi1>
    %124 = vector.broadcast %cst_107 : f32 to vector<2x32x128xf32>
    %125 = arith.select %123, %114, %124 : vector<2x32x128xi1>, vector<2x32x128xf32>
    %cst_108 = arith.constant dense<0xFF800000> : vector<2x128xf32>
    %126 = vector.multi_reduction <maximumf>, %125, %cst_108 [1] : vector<2x32x128xf32> to vector<2x128xf32>
    %127 = arith.maximumf %58, %126 : vector<2x128xf32>
    %c0_109 = arith.constant 0 : index
    %c0_110 = arith.constant 0 : index
    %128 = vector.load %arg5[%c0_109, %c0_110] : memref<128x128xf32, #tpu.memory_space<vmem>>, vector<128x128xf32>
    %cst_111 = arith.constant dense<0.000000e+00> : vector<2x128xf32>
    %129 = tpu.matmul %127, %128, %cst_111 {dimension_numbers = #tpu.dot_dimension_numbers<[1], [0], [0], [1], [0, 0, 1, 1], [], []>} : vector<2x128xf32>, vector<128x128xf32>, vector<2x128xf32> -> vector<2x128xf32>
    %c0_112 = arith.constant 0 : index
    %c0_113 = arith.constant 0 : index
    %130 = vector.load %arg6[%c0_112, %c0_113] : memref<1x128xf32, #tpu.memory_space<vmem>>, vector<1x128xf32>
    %131 = vector.broadcast %130 : vector<1x128xf32> to vector<2x128xf32>
    %132 = arith.addf %129, %131 : vector<2x128xf32>
    %c0_114 = arith.constant 0 : index
    %c0_115 = arith.constant 0 : index
    %133 = vector.load %arg7[%c0_114, %c0_115] : memref<2x128xf32, #tpu.memory_space<vmem>>, vector<2x128xf32>
    tpu.vector_store %arg7[%c0_114, %c0_115], %132 {strides = array<i32>} : memref<2x128xf32, #tpu.memory_space<vmem>>, vector<2x128xf32>,
    return
  }
  func.func @transform_0(%arg0: i32) -> (i32, i32, i32) {
    %c0_i32 = arith.constant 0 : i32
    %c0_i32_0 = arith.constant 0 : i32
    %c0_i32_1 = arith.constant 0 : i32
    return %arg0, %c0_i32, %c0_i32_0 : i32, i32, i32
  }
  func.func @transform_1(%arg0: i32) -> (i32, i32, i32) {
    %c0_i32 = arith.constant 0 : i32
    %c0_i32_0 = arith.constant 0 : i32
    %c0_i32_1 = arith.constant 0 : i32
    %c0_i32_2 = arith.constant 0 : i32
    return %c0_i32, %c0_i32_0, %c0_i32_1 : i32, i32, i32
  }
  func.func @transform_2(%arg0: i32) -> (i32, i32) {
    %c0_i32 = arith.constant 0 : i32
    %c0_i32_0 = arith.constant 0 : i32
    %c0_i32_1 = arith.constant 0 : i32
    return %c0_i32, %c0_i32_0 : i32, i32
  }
  func.func @transform_3(%arg0: i32) -> (i32, i32) {
    %c0_i32 = arith.constant 0 : i32
    %c0_i32_0 = arith.constant 0 : i32
    %c0_i32_1 = arith.constant 0 : i32
    return %c0_i32, %c0_i32_0 : i32, i32
  }
  func.func @transform_4(%arg0: i32) -> (i32, i32) {
    %c0_i32 = arith.constant 0 : i32
    %c0_i32_0 = arith.constant 0 : i32
    %c0_i32_1 = arith.constant 0 : i32
    return %c0_i32, %c0_i32_0 : i32, i32
  }
  func.func @transform_5(%arg0: i32) -> (i32, i32) {
    %c0_i32 = arith.constant 0 : i32
    %c0_i32_0 = arith.constant 0 : i32
    %c0_i32_1 = arith.constant 0 : i32
    return %c0_i32, %c0_i32_0 : i32, i32
  }
  func.func @transform_6(%arg0: i32) -> (i32, i32) {
    %c0_i32 = arith.constant 0 : i32
    %c0_i32_0 = arith.constant 0 : i32
    return %arg0, %c0_i32 : i32, i32
  }
}

</mosaic_0001>

<bundles_post_ra>
// kernel: tpu_custom_call.1
= control target key start
LH: loop header
LB: loop body
LE: loop exit
PB: predicated region body
PF: predicated region fallthrough
CT: control target
= control target key end

     0   :  { %vm68_vm0 = vcmask 1043456   ;;  %vm43_vm1 = vcmask 31744   ;;  %s4053_s0 = inlined_call_operand.vmem [shape: f32[2,72,4], index: 0, kind: input, shape index: {}]   ;;  %s4054_s1 = inlined_call_operand.vmem [shape: f32[8,4,128], index: 1, kind: input, shape index: {}]   ;;  %s4055_s2 = inlined_call_operand.vmem [shape: f32[1,128], index: 2, kind: input, shape index: {}]   ;;  %s4056_s3 = inlined_call_operand.vmem [shape: s32[1,128], index: 3, kind: input, shape index: {}]   ;;  %s4057_s4 = inlined_call_operand.vmem [shape: f32[128,128], index: 4, kind: input, shape index: {}]   ;;  %s4058_s5 = inlined_call_operand.vmem [shape: f32[1,128], index: 5, kind: input, shape index: {}]   ;;  %s4059_s6 = inlined_call_operand.hbm [shape: f32[2,128], index: 6, kind: output, shape index: {}]  }
   0x1   :  { %v2579_v0 = vld [vmem:[%s4054_s1 + $0x4] sm:$0xf]  ;;  %v35_v2 = vld [vmem:[%s4053_s0 + $0x11] sm:$0xff]  ;;  %v34_v3 = vld [vmem:[%s4053_s0 + $0x9] sm:$0xff] }
   0x2   :  { %v33_v1 = vld [vmem:[%s4053_s0 + $0x1] sm:$0xff]  ;;  %2894 = vmatprep.subr.msk.mxu0 %vm68_vm0, %v2579_v0  ;;  %3177 = vmatprep.subr.msk.mxu1 %vm68_vm0, %v2579_v0  ;;  %v36_v4 = vld [vmem:[%s4053_s0 + $0x19] sm:$0xff]  ;;  %v37_v5 = vld [vmem:[%s4053_s0 + $0x49] sm:$0xff] }
   0x3   :  { %2895 = vmatpush3.msk.msra.mxu0 %vm68_vm0, %v2579_v0  ;;  %3178 = vmatpush3.msk.msra.mxu1 %vm68_vm0, %v2579_v0  ;;  %v32_v6 = vld [vmem:[%s4054_s1] sm:$0xf]  ;;  %v38_v8 = vld [vmem:[%s4053_s0 + $0x51] sm:$0xff]  ;;  %v2598_v10 = vld [vmem:[%s4054_s1 + $0x8] sm:$0xf] }
   0x4   :  { %2896 = vmatprep.mubr.msk.f32.mxu0 %vm43_vm1, %v33_v1  ;;  %2899 = vmatprep.mubr.msk.f32.mxu1 %vm43_vm1, %v35_v2  ;;  %v24_v7 = vld [vmem:[%s4053_s0] sm:$0xff]  ;;  %v25_v12 = vld [vmem:[%s4053_s0 + $0x8] sm:$0xff]  ;;  %v26_v13 = vld [vmem:[%s4053_s0 + $0x10] sm:$0xff] }
   0x5   :  { %2897 = vmatmul.mubr.msk.f32.vlgmr.msra.gmra.mrb[0].mxu0 %vm43_vm1, %v34_v3  ;;  %2900 = vmatmul.mubr.msk.f32.vlgmr.msra.gmra.mrb[0].mxu1 %vm43_vm1, %v36_v4  ;;  %v39_v9 = vld [vmem:[%s4053_s0 + $0x59] sm:$0xff]  ;;  %v40_v11 = vld [vmem:[%s4053_s0 + $0x61] sm:$0xff]  ;;  %v1261_v16 = vld [vmem:[%s4053_s0 + $0x29] sm:$0xff] }
   0x6   :  { %3006 = vmatprep.subr.msk.mxu1 %vm68_vm0, %v2579_v0  ;;  %2902 = vmatprep.mubr.msk.f32.mxu1 %vm43_vm1, %v37_v5  ;;  %v1260_v14 = vld [vmem:[%s4053_s0 + $0x21] sm:$0xff]  ;;  %v27_v15 = vld [vmem:[%s4053_s0 + $0x18] sm:$0xff]  ;;  %v3434_v17 = vld [vmem:[%s4054_s1 + $0xc] sm:$0xf] }
   0x7   :  { %3007 = vmatpush3.msk.msra.mxu1 %vm68_vm0, %v2579_v0  ;;  %2908 = vmatprep.subr.msk.mxu0 %vm68_vm0, %v32_v6  ;;  %v28_v18 = vld [vmem:[%s4053_s0 + $0x48] sm:$0xff]  ;;  %v1262_v19 = vld [vmem:[%s4053_s0 + $0x31] sm:$0xff]  ;;  %v1263_v21 = vld [vmem:[%s4053_s0 + $0x39] sm:$0xff] }
   0x8   :  { %2909 = vmatpush3.msk.msra.mxu0 %vm68_vm0, %v32_v6  ;;  %2910 = vmatprep.mubr.msk.f32.mxu0 %vm43_vm1, %v24_v7  ;;  %v29_v20 = vld [vmem:[%s4053_s0 + $0x50] sm:$0xff]  ;;  %v30_v22 = vld [vmem:[%s4053_s0 + $0x58] sm:$0xff]  ;;  %v31_v24 = vld [vmem:[%s4053_s0 + $0x60] sm:$0xff] }
   0x9   :  { %2903 = vmatmul.mubr.msk.f32.gmra.mrb[2].mxu1 %vm43_vm1, %v38_v8  ;;  %3020 = vmatprep.subr.msk.mxu1 %vm68_vm0, %v32_v6  ;;  %v1264_v23 = vld [vmem:[%s4053_s0 + $0x69] sm:$0xff]  ;;  %v1265_v25 = vld [vmem:[%s4053_s0 + $0x71] sm:$0xff]  ;;  %v1266_v27 = vld [vmem:[%s4053_s0 + $0x79] sm:$0xff] }
   0xa   :  { %2905 = vmatprep.mubr.msk.f32.mxu1 %vm43_vm1, %v39_v9  ;;  %2922 = vmatprep.subr.msk.mxu0 %vm68_vm0, %v2598_v10  ;;  %v309_v26 = vld [vmem:[%s4053_s0 + $0x2] sm:$0xff]  ;;  %v310_v28 = vld [vmem:[%s4053_s0 + $0xa] sm:$0xff]  ;;  %v311_v30 = vld [vmem:[%s4053_s0 + $0x12] sm:$0xff] }
   0xb   :  { %v1267_v29 = vld [vmem:[%s4053_s0 + $0x81] sm:$0xff]  ;;  %v3500_v32 = vld [vmem:[%s4054_s1 + $0x10] sm:$0xf]  ;;  %v1255_v38 = vld [vmem:[%s4053_s0 + $0x38] sm:$0xff] }
   0xc   :  { %v1252_v31 = vld [vmem:[%s4053_s0 + $0x20] sm:$0xff]  ;;  %v1253_v34 = vld [vmem:[%s4053_s0 + $0x28] sm:$0xff]  ;;  %v1254_v36 = vld [vmem:[%s4053_s0 + $0x30] sm:$0xff] }
   0xd   :  { %2906 = vmatmul.mubr.msk.f32.gmra.mrb[4].mxu1 %vm43_vm1, %v40_v11  ;;  %2911 = vmatmul.mubr.msk.f32.vlgmr.msra.gmra.mrb[0].mxu0 %vm43_vm1, %v25_v12  ;;  %v312_v33 = vld [vmem:[%s4053_s0 + $0x1a] sm:$0xff]  ;;  %v313_v35 = vld [vmem:[%s4053_s0 + $0x4a] sm:$0xff]  ;;  %v314_v37 = vld [vmem:[%s4053_s0 + $0x52] sm:$0xff] }
   0xe   :  { %2913 = vmatprep.mubr.msk.f32.mxu0 %vm43_vm1, %v26_v13  ;;  %3008 = vmatprep.mubr.msk.f32.mxu1 %vm43_vm1, %v1260_v14  ;;  %v315_v39 = vld [vmem:[%s4053_s0 + $0x5a] sm:$0xff]  ;;  %v1256_v40 = vld [vmem:[%s4053_s0 + $0x68] sm:$0xff]  ;;  %v1257_v42 = vld [vmem:[%s4053_s0 + $0x70] sm:$0xff] }
   0xf   :  { %2923 = vmatpush3.msk.msra.mxu0 %vm68_vm0, %v2598_v10  ;;  %v316_v41 = vld [vmem:[%s4053_s0 + $0x62] sm:$0xff]  ;;  %v1258_v44 = vld [vmem:[%s4053_s0 + $0x78] sm:$0xff]  ;;  %v460_v45 = vld [vmem:[%s4053_s0 + $0xb] sm:$0xff] }
  0x10   :  { %2936 = vmatprep.subr.msk.mxu0 %vm68_vm0, %v3434_v17  ;;  %v459_v43 = vld [vmem:[%s4053_s0 + $0x3] sm:$0xff]  ;;  %v461_v47 = vld [vmem:[%s4053_s0 + $0x13] sm:$0xff]  ;;  %v462_v50 = vld [vmem:[%s4053_s0 + $0x1b] sm:$0xff] }
  0x11   :  { %2914 = vmatmul.mubr.msk.f32.gmra.mrb[2].mxu0 %vm43_vm1, %v27_v15  ;;  %3009 = vmatmul.mubr.msk.f32.vlgmr.msra.gmra.mrb[6].mxu1 %vm43_vm1, %v1261_v16  ;;  %v1259_v46 = vld [vmem:[%s4053_s0 + $0x80] sm:$0xff]  ;;  %v3576_v49 = vld [vmem:[%s4054_s1 + $0x14] sm:$0xf]  ;;  %v1527_v51 = vld [vmem:[%s4053_s0 + $0x2a] sm:$0xff] }
  0x12   :  { %3021 = vmatpush3.msk.msra.mxu1 %vm68_vm0, %v32_v6  ;;  %2916 = vmatprep.mubr.msk.f32.mxu0 %vm43_vm1, %v28_v18  ;;  %v1526_v48 = vld [vmem:[%s4053_s0 + $0x22] sm:$0xff] }
  0x13   :  { %3011 = vmatprep.mubr.msk.f32.mxu1 %vm43_vm1, %v1262_v19  ;;  %3034 = vmatprep.subr.msk.mxu1 %vm68_vm0, %v2598_v10 }
  0x15   :  { %2917 = vmatmul.mubr.msk.f32.gmra.mrb[4].mxu0 %vm43_vm1, %v29_v20  ;;  %3012 = vmatmul.mubr.msk.f32.gmra.mrb[8].mxu1 %vm43_vm1, %v1263_v21 }
  0x16   :  { %2919 = vmatprep.mubr.msk.f32.mxu0 %vm43_vm1, %v30_v22  ;;  %3014 = vmatprep.mubr.msk.f32.mxu1 %vm43_vm1, %v1264_v23 }
  0x19   :  { %2920 = vmatmul.mubr.msk.f32.gmra.mrb[6].mxu0 %vm43_vm1, %v31_v24  ;;  %3015 = vmatmul.mubr.msk.f32.gmra.mrb[10].mxu1 %vm43_vm1, %v1265_v25 }
  0x1a   :  { %2924 = vmatprep.mubr.msk.f32.mxu0 %vm43_vm1, %v309_v26  ;;  %3017 = vmatprep.mubr.msk.f32.mxu1 %vm43_vm1, %v1266_v27 }
  0x1d   :  { %2925 = vmatmul.mubr.msk.f32.vlgmr.msra.gmra.mrb[0].mxu0 %vm43_vm1, %v310_v28  ;;  %3018 = vmatmul.mubr.msk.f32.gmra.mrb[12].mxu1 %vm43_vm1, %v1267_v29 }
  0x1e   :  { %2927 = vmatprep.mubr.msk.f32.mxu0 %vm43_vm1, %v311_v30  ;;  %3022 = vmatprep.mubr.msk.f32.mxu1 %vm43_vm1, %v1252_v31 }
  0x1f   :  { %2937 = vmatpush3.msk.msra.mxu0 %vm68_vm0, %v3434_v17 }
  0x20   :  { %2950 = vmatprep.subr.msk.mxu0 %vm68_vm0, %v3500_v32 }
  0x21   :  { %2928 = vmatmul.mubr.msk.f32.gmra.mrb[2].mxu0 %vm43_vm1, %v312_v33  ;;  %3023 = vmatmul.mubr.msk.f32.vlgmr.msra.gmra.mrb[6].mxu1 %vm43_vm1, %v1253_v34 }
  0x22   :  { %3035 = vmatpush3.msk.msra.mxu1 %vm68_vm0, %v2598_v10  ;;  %2930 = vmatprep.mubr.msk.f32.mxu0 %vm43_vm1, %v313_v35 }
  0x23   :  { %3025 = vmatprep.mubr.msk.f32.mxu1 %vm43_vm1, %v1254_v36  ;;  %3048 = vmatprep.subr.msk.mxu1 %vm68_vm0, %v3434_v17 }
  0x25   :  { %2931 = vmatmul.mubr.msk.f32.gmra.mrb[4].mxu0 %vm43_vm1, %v314_v37  ;;  %3026 = vmatmul.mubr.msk.f32.gmra.mrb[8].mxu1 %vm43_vm1, %v1255_v38 }
  0x26   :  { %2933 = vmatprep.mubr.msk.f32.mxu0 %vm43_vm1, %v315_v39  ;;  %3028 = vmatprep.mubr.msk.f32.mxu1 %vm43_vm1, %v1256_v40 }
  0x29   :  { %2934 = vmatmul.mubr.msk.f32.gmra.mrb[6].mxu0 %vm43_vm1, %v316_v41  ;;  %3029 = vmatmul.mubr.msk.f32.gmra.mrb[10].mxu1 %vm43_vm1, %v1257_v42 }
  0x2a   :  { %2938 = vmatprep.mubr.msk.f32.mxu0 %vm43_vm1, %v459_v43  ;;  %3031 = vmatprep.mubr.msk.f32.mxu1 %vm43_vm1, %v1258_v44 }
  0x2d   :  { %2939 = vmatmul.mubr.msk.f32.vlgmr.msra.gmra.mrb[0].mxu0 %vm43_vm1, %v460_v45  ;;  %3032 = vmatmul.mubr.msk.f32.gmra.mrb[12].mxu1 %vm43_vm1, %v1259_v46 }
  0x2e   :  { %2941 = vmatprep.mubr.msk.f32.mxu0 %vm43_vm1, %v461_v47  ;;  %3036 = vmatprep.mubr.msk.f32.mxu1 %vm43_vm1, %v1526_v48 }
  0x2f   :  { %11 = vsyncpa [#allocation3], 0  ;;  %v463_v52 = vld [vmem:[%s4053_s0 + $0x4b] sm:$0xff]  ;;  %2951 = vmatpush3.msk.msra.mxu0 %vm68_vm0, %v3500_v32  ;;  %v464_v54 = vld [vmem:[%s4053_s0 + $0x53] sm:$0xff]  ;;  %vm3320_vm2 = vmmov 0   ;;  %vm2491_vm7 = vcmask 1041409  }
  0x30   :  { %v1528_v53 = vld [vmem:[%s4053_s0 + $0x32] sm:$0xff]  ;;  %2964 = vmatprep.subr.msk.mxu0 %vm68_vm0, %v3576_v49  ;;  %v1529_v55 = vld [vmem:[%s4053_s0 + $0x3a] sm:$0xff]  ;;  %v1530_v57 = vld [vmem:[%s4053_s0 + $0x6a] sm:$0xff]  ;;  %s3322_s8 = smov [#allocation2]  }
  0x31   :  { %2942 = vmatmul.mubr.msk.f32.gmra.mrb[2].mxu0 %vm43_vm1, %v462_v50  ;;  %3037 = vmatmul.mubr.msk.f32.vlgmr.msra.gmra.mrb[6].mxu1 %vm43_vm1, %v1527_v51  ;;  %v465_v56 = vld [vmem:[%s4053_s0 + $0x5b] sm:$0xff]  ;;  %v466_v58 = vld [vmem:[%s4053_s0 + $0x63] sm:$0xff]  ;;  %v1531_v59 = vld [vmem:[%s4053_s0 + $0x72] sm:$0xff]  ;;  %s2571_s9 = sshll.u32 %s3322_s8, 4  ;;  %s2572_s9 = int_to_ptr.vmem [resolvable:$true] %s2571_s9 }
  0x32   :  { %3049 = vmatpush3.msk.msra.mxu1 %vm68_vm0, %v3434_v17  ;;  %2944 = vmatprep.mubr.msk.f32.mxu0 %vm43_vm1, %v463_v52  ;;  %v609_v60 = vld [vmem:[%s4053_s0 + $0x4] sm:$0xff]  ;;  %v1532_v61 = vld [vmem:[%s4053_s0 + $0x7a] sm:$0xff]  ;;  %v610_v62 = vld [vmem:[%s4053_s0 + $0xc] sm:$0xff]  ;;  %s3295_s10 = scalar_lea.vmem %s2572_s9, 32  ;;  %p3300_p1 = scmp.lt.s32.totalorder %s2572_s9, %s2572_s9 }
  0x33   :  { %3039 = vmatprep.mubr.msk.f32.mxu1 %vm43_vm1, %v1528_v53  ;;  %3062 = vmatprep.subr.msk.mxu1 %vm68_vm0, %v3500_v32  ;;  %v1533_v63 = vld [vmem:[%s4053_s0 + $0x82] sm:$0xff]  ;;  %v611_v0 = vld [vmem:[%s4053_s0 + $0x14] sm:$0xff]  ;;  %v1672_v4 = vld [vmem:[%s4053_s0 + $0x2b] sm:$0xff]  ;;  %p3296_p0 = scmp.ne.s32.totalorder %s2572_s9, %s3295_s10  ;;  %p3301_p2 = scmp.lt.s32.totalorder %s3295_s10, %s3295_s10 }
  0x34   :  { %v1671_v1 = vld [vmem:[%s4053_s0 + $0x23] sm:$0xff]  ;;  %v3653_v2 = vld [vmem:[%s4054_s1 + $0x18] sm:$0xf]  ;;  %v613_v5 = vld [vmem:[%s4053_s0 + $0x4c] sm:$0xff] }
  0x35   :  { %2945 = vmatmul.mubr.msk.f32.gmra.mrb[4].mxu0 %vm43_vm1, %v464_v54  ;;  %3040 = vmatmul.mubr.msk.f32.gmra.mrb[8].mxu1 %vm43_vm1, %v1529_v55  ;;  %v612_v3 = vld [vmem:[%s4053_s0 + $0x1c] sm:$0xff]  ;;  %v1673_v6 = vld [vmem:[%s4053_s0 + $0x33] sm:$0xff]  ;;  %v1675_v10 = vld [vmem:[%s4053_s0 + $0x6b] sm:$0xff]  ;;  %p3302_p3 = por %p3301_p2, %p3300_p1 }
  0x36   :  { %2947 = vmatprep.mubr.msk.f32.mxu0 %vm43_vm1, %v465_v56  ;;  %3042 = vmatprep.mubr.msk.f32.mxu1 %vm43_vm1, %v1530_v57  ;;  %v614_v7 = vld [vmem:[%s4053_s0 + $0x54] sm:$0xff]  ;;  %v615_v9 = vld [vmem:[%s4053_s0 + $0x5c] sm:$0xff]  ;;  %v616_v11 = vld [vmem:[%s4053_s0 + $0x64] sm:$0xff] }
  0x37   :  { %v1674_v8 = vld [vmem:[%s4053_s0 + $0x3b] sm:$0xff]  ;;  %v1676_v12 = vld [vmem:[%s4053_s0 + $0x73] sm:$0xff]  ;;  %v759_v13 = vld [vmem:[%s4053_s0 + $0x5] sm:$0xff]  ;;  %p3303_p4 = pnand %p3302_p3, %p3296_p0 }
  0x38   :  { %v1677_v14 = vld [vmem:[%s4053_s0 + $0x7b] sm:$0xff]  ;;  %v760_v15 = vld [vmem:[%s4053_s0 + $0xd] sm:$0xff]  ;;  %v1678_v16 = vld [vmem:[%s4053_s0 + $0x83] sm:$0xff] }
  0x39   :  { %2948 = vmatmul.mubr.msk.f32.gmra.mrb[6].mxu0 %vm43_vm1, %v466_v58  ;;  %3043 = vmatmul.mubr.msk.f32.gmra.mrb[10].mxu1 %vm43_vm1, %v1531_v59  ;;  %v761_v17 = vld [vmem:[%s4053_s0 + $0x15] sm:$0xff]  ;;  %v1816_v18 = vld [vmem:[%s4053_s0 + $0x24] sm:$0xff]  ;;  %v1817_v21 = vld [vmem:[%s4053_s0 + $0x2c] sm:$0xff] }
  0x3a   :  { %2952 = vmatprep.mubr.msk.f32.mxu0 %vm43_vm1, %v609_v60  ;;  %3045 = vmatprep.mubr.msk.f32.mxu1 %vm43_vm1, %v1532_v61  ;;  %v3730_v19 = vld [vmem:[%s4054_s1 + $0x1c] sm:$0xf]  ;;  %v763_v22 = vld [vmem:[%s4053_s0 + $0x4d] sm:$0xff]  ;;  %v766_v28 = vld [vmem:[%s4053_s0 + $0x65] sm:$0xff] }
  0x3b   :  { %v762_v20 = vld [vmem:[%s4053_s0 + $0x1d] sm:$0xff]  ;;  %v1818_v23 = vld [vmem:[%s4053_s0 + $0x34] sm:$0xff]  ;;  %v1820_v27 = vld [vmem:[%s4053_s0 + $0x6c] sm:$0xff] }
  0x3c   :  { %v764_v24 = vld [vmem:[%s4053_s0 + $0x55] sm:$0xff]  ;;  %v765_v26 = vld [vmem:[%s4053_s0 + $0x5d] sm:$0xff]  ;;  %v909_v30 = vld [vmem:[%s4053_s0 + $0x6] sm:$0xff] }
  0x3d   :  { %2953 = vmatmul.mubr.msk.f32.vlgmr.msra.gmra.mrb[0].mxu0 %vm43_vm1, %v610_v62  ;;  %3046 = vmatmul.mubr.msk.f32.gmra.mrb[12].mxu1 %vm43_vm1, %v1533_v63  ;;  %v1819_v25 = vld [vmem:[%s4053_s0 + $0x3c] sm:$0xff]  ;;  %v1821_v29 = vld [vmem:[%s4053_s0 + $0x74] sm:$0xff]  ;;  %v1823_v33 = vld [vmem:[%s4053_s0 + $0x84] sm:$0xff] }
  0x3e   :  { %2955 = vmatprep.mubr.msk.f32.mxu0 %vm43_vm1, %v611_v0  ;;  %3050 = vmatprep.mubr.msk.f32.mxu1 %vm43_vm1, %v1671_v1  ;;  %v1822_v31 = vld [vmem:[%s4053_s0 + $0x7c] sm:$0xff]  ;;  %v1961_v35 = vld [vmem:[%s4053_s0 + $0x25] sm:$0xff]  ;;  %v1962_v37 = vld [vmem:[%s4053_s0 + $0x2d] sm:$0xff] }
  0x3f   :  { %2965 = vmatpush3.msk.msra.mxu0 %vm68_vm0, %v3576_v49  ;;  %v911_v34 = vld [vmem:[%s4053_s0 + $0x16] sm:$0xff]  ;;  %v912_v36 = vld [vmem:[%s4053_s0 + $0x1e] sm:$0xff]  ;;  %v913_v38 = vld [vmem:[%s4053_s0 + $0x4e] sm:$0xff] }
  0x40   :  { %2978 = vmatprep.subr.msk.mxu0 %vm68_vm0, %v3653_v2  ;;  %v1963_v39 = vld [vmem:[%s4053_s0 + $0x35] sm:$0xff]  ;;  %v1964_v41 = vld [vmem:[%s4053_s0 + $0x3d] sm:$0xff]  ;;  %v1965_v43 = vld [vmem:[%s4053_s0 + $0x6d] sm:$0xff] }
  0x41   :  { %2956 = vmatmul.mubr.msk.f32.gmra.mrb[2].mxu0 %vm43_vm1, %v612_v3  ;;  %3051 = vmatmul.mubr.msk.f32.vlgmr.msra.gmra.mrb[6].mxu1 %vm43_vm1, %v1672_v4  ;;  %v914_v40 = vld [vmem:[%s4053_s0 + $0x56] sm:$0xff]  ;;  %v915_v42 = vld [vmem:[%s4053_s0 + $0x5e] sm:$0xff]  ;;  %v916_v44 = vld [vmem:[%s4053_s0 + $0x66] sm:$0xff] }
  0x42   :  { %3063 = vmatpush3.msk.msra.mxu1 %vm68_vm0, %v3500_v32  ;;  %2958 = vmatprep.mubr.msk.f32.mxu0 %vm43_vm1, %v613_v5  ;;  %v910_v32 = vld [vmem:[%s4053_s0 + $0xe] sm:$0xff]  ;;  %v1967_v47 = vld [vmem:[%s4053_s0 + $0x7d] sm:$0xff]  ;;  %v2106_v51 = vld [vmem:[%s4053_s0 + $0x26] sm:$0xff] }
  0x43   :  { %3053 = vmatprep.mubr.msk.f32.mxu1 %vm43_vm1, %v1673_v6  ;;  %3076 = vmatprep.subr.msk.mxu1 %vm68_vm0, %v3576_v49  ;;  %v1966_v45 = vld [vmem:[%s4053_s0 + $0x75] sm:$0xff]  ;;  %v1059_v46 = vld [vmem:[%s4053_s0 + $0x7] sm:$0xff]  ;;  %v1062_v52 = vld [vmem:[%s4053_s0 + $0x1f] sm:$0xff] }
  0x44   :  { %v1060_v48 = vld [vmem:[%s4053_s0 + $0xf] sm:$0xff]  ;;  %v1061_v50 = vld [vmem:[%s4053_s0 + $0x17] sm:$0xff]  ;;  %v1065_v58 = vld [vmem:[%s4053_s0 + $0x5f] sm:$0xff] }
  0x45   :  { %2959 = vmatmul.mubr.msk.f32.gmra.mrb[4].mxu0 %vm43_vm1, %v614_v7  ;;  %3054 = vmatmul.mubr.msk.f32.gmra.mrb[8].mxu1 %vm43_vm1, %v1674_v8  ;;  %v2107_v53 = vld [vmem:[%s4053_s0 + $0x2e] sm:$0xff]  ;;  %v2108_v55 = vld [vmem:[%s4053_s0 + $0x36] sm:$0xff]  ;;  %v2109_v57 = vld [vmem:[%s4053_s0 + $0x3e] sm:$0xff] }
  0x46   :  { %2961 = vmatprep.mubr.msk.f32.mxu0 %vm43_vm1, %v615_v9  ;;  %3056 = vmatprep.mubr.msk.f32.mxu1 %vm43_vm1, %v1675_v10  ;;  %v1063_v54 = vld [vmem:[%s4053_s0 + $0x4f] sm:$0xff]  ;;  %v1064_v56 = vld [vmem:[%s4053_s0 + $0x57] sm:$0xff]  ;;  %v1066_v60 = vld [vmem:[%s4053_s0 + $0x67] sm:$0xff] }
  0x47   :  { %v2110_v59 = vld [vmem:[%s4053_s0 + $0x6e] sm:$0xff]  ;;  %v2111_v61 = vld [vmem:[%s4053_s0 + $0x76] sm:$0xff]  ;;  %v2112_v62 = vld [vmem:[%s4053_s0 + $0x7e] sm:$0xff] }
  0x48   :  { %v2113_v63 = vld [vmem:[%s4053_s0 + $0x86] sm:$0xff]  ;;  %v2252_v1 = vld [vmem:[%s4053_s0 + $0x2f] sm:$0xff]  ;;  %v2256_v5 = vld [vmem:[%s4053_s0 + $0x77] sm:$0xff] }
  0x49   :  { %2962 = vmatmul.mubr.msk.f32.gmra.mrb[6].mxu0 %vm43_vm1, %v616_v11  ;;  %3057 = vmatmul.mubr.msk.f32.gmra.mrb[10].mxu1 %vm43_vm1, %v1676_v12  ;;  %v2251_v0 = vld [vmem:[%s4053_s0 + $0x27] sm:$0xff]  ;;  %v2254_v3 = vld [vmem:[%s4053_s0 + $0x3f] sm:$0xff]  ;;  %v2255_v4 = vld [vmem:[%s4053_s0 + $0x6f] sm:$0xff] }
  0x4a   :  { %2966 = vmatprep.mubr.msk.f32.mxu0 %vm43_vm1, %v759_v13  ;;  %3059 = vmatprep.mubr.msk.f32.mxu1 %vm43_vm1, %v1677_v14  ;;  %v2257_v6 = vld [vmem:[%s4053_s0 + $0x7f] sm:$0xff]  ;;  %v2258_v7 = vld [vmem:[%s4053_s0 + $0x87] sm:$0xff]  ;;  %v3319_v13 = vmov 0.0|0.0  }
  0x4b   :  { %v2466_v9 = vld [vmem:[%s4057_s4] sm:$0xff]  ;;  %v2467_v10 = vld [vmem:[%s4057_s4 + $0x8] sm:$0xff] }
  0x4c   :  { %v3154_v12 = vpack.c.bf16 %v2467_v10, %v2466_v9 }
  0x4d   :  { %2967 = vmatmul.mubr.msk.f32.vlgmr.msra.gmra.mrb[0].mxu0 %vm43_vm1, %v760_v15  ;;  %3060 = vmatmul.mubr.msk.f32.gmra.mrb[12].mxu1 %vm43_vm1, %v1678_v16  ;;  %v2468_v15 = vld [vmem:[%s4057_s4 + $0x10] sm:$0xff]  ;;  %v2469_v16 = vld [vmem:[%s4057_s4 + $0x18] sm:$0xff] }
  0x4e   :  { %2969 = vmatprep.mubr.msk.f32.mxu0 %vm43_vm1, %v761_v17  ;;  %3064 = vmatprep.mubr.msk.f32.mxu1 %vm43_vm1, %v1816_v18  ;;  %v3157_v18 = vpack.c.bf16 %v2469_v16, %v2468_v15 }
  0x4f   :  { %2979 = vmatpush3.msk.msra.mxu0 %vm68_vm0, %v3653_v2 }
  0x50   :  { %2992 = vmatprep.subr.msk.mxu0 %vm68_vm0, %v3730_v19 }
  0x51   :  { %2970 = vmatmul.mubr.msk.f32.gmra.mrb[2].mxu0 %vm43_vm1, %v762_v20  ;;  %3065 = vmatmul.mubr.msk.f32.vlgmr.msra.gmra.mrb[6].mxu1 %vm43_vm1, %v1817_v21  ;;  %v2470_v20 = vld [vmem:[%s4057_s4 + $0x20] sm:$0xff]  ;;  %v2471_v21 = vld [vmem:[%s4057_s4 + $0x28] sm:$0xff] }
  0x52   :  { %3077 = vmatpush3.msk.msra.mxu1 %vm68_vm0, %v3576_v49  ;;  %2972 = vmatprep.mubr.msk.f32.mxu0 %vm43_vm1, %v763_v22  ;;  %v1968_v49 = vld [vmem:[%s4053_s0 + $0x85] sm:$0xff] }
  0x53   :  { %3067 = vmatprep.mubr.msk.f32.mxu1 %vm43_vm1, %v1818_v23  ;;  %3090 = vmatprep.subr.msk.mxu1 %vm68_vm0, %v3653_v2  ;;  %v3160_v23 = vpack.c.bf16 %v2471_v21, %v2470_v20 }
  0x55   :  { %2973 = vmatmul.mubr.msk.f32.gmra.mrb[4].mxu0 %vm43_vm1, %v764_v24  ;;  %3068 = vmatmul.mubr.msk.f32.gmra.mrb[8].mxu1 %vm43_vm1, %v1819_v25  ;;  %v2472_v24 = vld [vmem:[%s4057_s4 + $0x30] sm:$0xff]  ;;  %v2473_v25 = vld [vmem:[%s4057_s4 + $0x38] sm:$0xff] }
  0x56   :  { %2975 = vmatprep.mubr.msk.f32.mxu0 %vm43_vm1, %v765_v26  ;;  %3070 = vmatprep.mubr.msk.f32.mxu1 %vm43_vm1, %v1820_v27  ;;  %v3163_v26 = vpack.c.bf16 %v2473_v25, %v2472_v24  ;;  %v2474_v27 = vld [vmem:[%s4057_s4 + $0x40] sm:$0xff] }
  0x57   :  { %v2731_v25 = vld [vmem:[%s4056_s3] ss:$0 sm:$0xff] }
  0x59   :  { %2976 = vmatmul.mubr.msk.f32.gmra.mrb[6].mxu0 %vm43_vm1, %v766_v28  ;;  %3071 = vmatmul.mubr.msk.f32.gmra.mrb[10].mxu1 %vm43_vm1, %v1821_v29  ;;  %v2475_v28 = vld [vmem:[%s4057_s4 + $0x48] sm:$0xff] }
  0x5a   :  { %2980 = vmatprep.mubr.msk.f32.mxu0 %vm43_vm1, %v909_v30  ;;  %3073 = vmatprep.mubr.msk.f32.mxu1 %vm43_vm1, %v1822_v31  ;;  %v3166_v29 = vpack.c.bf16 %v2475_v28, %v2474_v27  ;;  %v2476_v30 = vld [vmem:[%s4057_s4 + $0x50] sm:$0xff]  ;;  %v2477_v31 = vld [vmem:[%s4057_s4 + $0x58] sm:$0xff] }
  0x5d   :  { %2981 = vmatmul.mubr.msk.f32.vlgmr.msra.gmra.mrb[0].mxu0 %vm43_vm1, %v910_v32  ;;  %3074 = vmatmul.mubr.msk.f32.gmra.mrb[12].mxu1 %vm43_vm1, %v1823_v33  ;;  %v3169_v32 = vpack.c.bf16 %v2477_v31, %v2476_v30  ;;  %v2478_v33 = vld [vmem:[%s4057_s4 + $0x60] sm:$0xff] }
  0x5e   :  { %2983 = vmatprep.mubr.msk.f32.mxu0 %vm43_vm1, %v911_v34  ;;  %3078 = vmatprep.mubr.msk.f32.mxu1 %vm43_vm1, %v1961_v35  ;;  %v2479_v34 = vld [vmem:[%s4057_s4 + $0x68] sm:$0xff] }
  0x5f   :  { %2993 = vmatpush3.msk.msra.mxu0 %vm68_vm0, %v3730_v19  ;;  %v3172_v35 = vpack.c.bf16 %v2479_v34, %v2478_v33 }
  0x60   :  { %3153 = vmatprep.subr.bf16.mxu0 %v3319_v13 }
  0x61   :  { %2984 = vmatmul.mubr.msk.f32.gmra.mrb[2].mxu0 %vm43_vm1, %v912_v36  ;;  %3079 = vmatmul.mubr.msk.f32.vlgmr.msra.gmra.mrb[6].mxu1 %vm43_vm1, %v1962_v37  ;;  %v2480_v36 = vld [vmem:[%s4057_s4 + $0x70] sm:$0xff]  ;;  %v2481_v37 = vld [vmem:[%s4057_s4 + $0x78] sm:$0xff] }
  0x62   :  { %3091 = vmatpush3.msk.msra.mxu1 %vm68_vm0, %v3653_v2  ;;  %2986 = vmatprep.mubr.msk.f32.mxu0 %vm43_vm1, %v913_v38  ;;  %v2253_v2 = vld [vmem:[%s4053_s0 + $0x37] sm:$0xff]  ;;  %v3175_v38 = vpack.c.bf16 %v2481_v37, %v2480_v36 }
  0x63   :  { %3081 = vmatprep.mubr.msk.f32.mxu1 %vm43_vm1, %v1963_v39  ;;  %3104 = vmatprep.subr.msk.mxu1 %vm68_vm0, %v3730_v19  ;;  %v3321_v39 = vmov 0.0  }
  0x65   :  { %2987 = vmatmul.mubr.msk.f32.gmra.mrb[4].mxu0 %vm43_vm1, %v914_v40  ;;  %3082 = vmatmul.mubr.msk.f32.gmra.mrb[8].mxu1 %vm43_vm1, %v1964_v41 }
  0x66   :  { %2989 = vmatprep.mubr.msk.f32.mxu0 %vm43_vm1, %v915_v42  ;;  %3084 = vmatprep.mubr.msk.f32.mxu1 %vm43_vm1, %v1965_v43  ;;  %v4009_v42 = vld [vmem:[%s4055_s2] ss:$0 sm:$0xff] }
  0x69   :  { %2990 = vmatmul.mubr.msk.f32.gmra.mrb[6].mxu0 %vm43_vm1, %v916_v44  ;;  %3085 = vmatmul.mubr.msk.f32.gmra.mrb[10].mxu1 %vm43_vm1, %v1966_v45 }
  0x6a   :  { %2994 = vmatprep.mubr.msk.f32.mxu0 %vm43_vm1, %v1059_v46  ;;  %3087 = vmatprep.mubr.msk.f32.mxu1 %vm43_vm1, %v1967_v47 }
  0x6d   :  { %2995 = vmatmul.mubr.msk.f32.vlgmr.msra.gmra.mrb[0].mxu0 %vm43_vm1, %v1060_v48  ;;  %3088 = vmatmul.mubr.msk.f32.gmra.mrb[12].mxu1 %vm43_vm1, %v1968_v49 }
  0x6e   :  { %2997 = vmatprep.mubr.msk.f32.mxu0 %vm43_vm1, %v1061_v50  ;;  %3092 = vmatprep.mubr.msk.f32.mxu1 %vm43_vm1, %v2106_v51 }
  0x6f   :  { %3155 = vmatpush3.bf16.msra.mxu0 %v3154_v12 }
  0x70   :  { %3156 = vmatprep.subr.bf16.mxu0 %v3319_v13 }
  0x71   :  { %2998 = vmatmul.mubr.msk.f32.gmra.mrb[2].mxu0 %vm43_vm1, %v1062_v52  ;;  %3093 = vmatmul.mubr.msk.f32.vlgmr.msra.gmra.mrb[6].mxu1 %vm43_vm1, %v2107_v53 }
  0x72   :  { %3105 = vmatpush3.msk.msra.mxu1 %vm68_vm0, %v3730_v19  ;;  %3000 = vmatprep.mubr.msk.f32.mxu0 %vm43_vm1, %v1063_v54 }
  0x73   :  { %3095 = vmatprep.mubr.msk.f32.mxu1 %vm43_vm1, %v2108_v55  ;;  %3158 = vmatpush3.bf16.msra.mxu0 %v3157_v18 }
  0x74   :  { %3159 = vmatprep.subr.bf16.mxu0 %v3319_v13 }
  0x75   :  { %3001 = vmatmul.mubr.msk.f32.gmra.mrb[4].mxu0 %vm43_vm1, %v1064_v56  ;;  %3096 = vmatmul.mubr.msk.f32.gmra.mrb[8].mxu1 %vm43_vm1, %v2109_v57 }
  0x76   :  { %3003 = vmatprep.mubr.msk.f32.mxu0 %vm43_vm1, %v1065_v58  ;;  %3098 = vmatprep.mubr.msk.f32.mxu1 %vm43_vm1, %v2110_v59  ;;  %v2412_v59 = vlaneseq }
  0x77   :  { %3161 = vmatpush3.bf16.msra.mxu0 %v3160_v23 }
  0x78   :  { %3162 = vmatprep.subr.bf16.mxu0 %v3319_v13 }
  0x79   :  { %3004 = vmatmul.mubr.msk.f32.gmra.mrb[6].mxu0 %vm43_vm1, %v1066_v60  ;;  %3099 = vmatmul.mubr.msk.f32.gmra.mrb[10].mxu1 %vm43_vm1, %v2111_v61 }
  0x7a   :  { %3101 = vmatprep.mubr.msk.f32.mxu1 %vm43_vm1, %v2112_v62  ;;  %3150 = vmatprep.mubr.msk.f32.mxu0 %vm3320_vm2, %v3321_v39 }
  0x7b   :  { %3164 = vmatpush3.bf16.msra.mxu0 %v3163_v26 }
  0x7c   :  { %3165 = vmatprep.subr.bf16.mxu0 %v3319_v13 }
  0x7d   :  { %3102 = vmatmul.mubr.msk.f32.gmra.mrb[12].mxu1 %vm43_vm1, %v2113_v63 }
  0x7e   :  { %3106 = vmatprep.mubr.msk.f32.mxu1 %vm43_vm1, %v2251_v0 }
  0x7f   :  { %3167 = vmatpush3.bf16.msra.mxu0 %v3166_v29 }
  0x80   :  { %3168 = vmatprep.subr.bf16.mxu0 %v3319_v13 }
  0x81   :  { %3107 = vmatmul.mubr.msk.f32.vlgmr.msra.gmra.mrb[6].mxu1 %vm43_vm1, %v2252_v1 }
  0x82   :  { %3109 = vmatprep.mubr.msk.f32.mxu1 %vm43_vm1, %v2253_v2 }
  0x83   :  { %3170 = vmatpush3.bf16.msra.mxu0 %v3169_v32 }
  0x84   :  { %3171 = vmatprep.subr.bf16.mxu0 %v3319_v13 }
  0x85   :  { %3110 = vmatmul.mubr.msk.f32.gmra.mrb[8].mxu1 %vm43_vm1, %v2254_v3 }
  0x86   :  { %3112 = vmatprep.mubr.msk.f32.mxu1 %vm43_vm1, %v2255_v4 }
  0x87   :  { %3173 = vmatpush3.bf16.msra.mxu0 %v3172_v35 }
  0x88   :  { %3174 = vmatprep.subr.bf16.mxu0 %v3319_v13 }
  0x89   :  { %3113 = vmatmul.mubr.msk.f32.gmra.mrb[10].mxu1 %vm43_vm1, %v2256_v5  ;;  %v2413_v5 = vshrl.u32 %v2412_v59, 7 }
  0x8a   :  { %3115 = vmatprep.mubr.msk.f32.mxu1 %vm43_vm1, %v2257_v6 }
  0x8b   :  { %3176 = vmatpush3.bf16.msra.mxu0 %v3175_v38  ;;  %v2414_v12 = vadd.s32 8, %v2413_v5  ;;  %v2416_v13 = vadd.s32 24, %v2413_v5  ;;  %v2415_v15 = vadd.s32 16, %v2413_v5  ;;  %v2417_v26 = vadd.s32 32, %v2413_v5 }
  0x8d   :  { %3116 = vmatmul.mubr.msk.f32.gmra.mrb[12].mxu1 %vm43_vm1, %v2258_v7  ;;  %v2420_v24 = vadd.s32 32, %v2416_v13  ;;  %v2419_v27 = vadd.s32 32, %v2415_v15  ;;  %vm2426_vm5 = vcmp.le.s32.totalorder %v2417_v26, %v2731_v25  ;;  %v2732_v26 = vld [vmem:[%s4058_s5] ss:$0 sm:$0xff] }
  0x8f   :  { %vm2429_vm4 = vcmp.le.s32.totalorder %v2420_v24, %v2731_v25  ;;  %vm2428_vm6 = vcmp.le.s32.totalorder %v2419_v27, %v2731_v25 }
  0xd8   :  { %v2901_v8 = vpop.f32.mrb[0].mxu1 }
  0xd9   :  { %v148_v11 = vpop.f32.mrb[1].mxu1 }
  0xdc   :  { %v2904_v14 = vpop.f32.mrb[2].mxu1 }
  0xdd   :  { %v158_v17 = vpop.f32.mrb[3].mxu1 }
  0xe0   :  { %v2907_v19 = vpop.f32.mrb[4].mxu1 }
  0xe1   :  { %v168_v22 = vpop.f32.mrb[5].mxu1 }
 0x140   :  { %v2996_v40 = vpop.f32.mrb[0].mxu0 }
 0x141   :  { %v1162_v41 = vpop.f32.mrb[1].mxu0  ;;  %v1217_v44 = vadd.f32 %v2996_v40, %v4009_v42 }
 0x142   :  { %v1216_v47 = vadd.f32 %v4009_v42, %v1162_v41 }
 0x143   :  { %v1225_v52 = vmax.f32 %v1217_v44, 0.0 }
 0x144   :  { %v2999_v43 = vpop.f32.mrb[2].mxu0  ;;  %v1224_v56 = vmax.f32 %v1216_v47, 0.0 }
 0x145   :  { %v3179_v45 = vadd.f32 %v2999_v43, %v2901_v8  ;;  %v1172_v46 = vpop.f32.mrb[3].mxu0 }
 0x146   :  { %v3180_v48 = vadd.f32 %v1172_v46, %v148_v11 }
 0x147   :  { %v1219_v49 = vadd.f32 %v3179_v45, %v4009_v42 }
 0x148   :  { %v1218_v50 = vadd.f32 %v3180_v48, %v4009_v42  ;;  %v3002_v51 = vpop.f32.mrb[4].mxu0 }
 0x149   :  { %v1227_v53 = vmax.f32 %v1219_v49, 0.0  ;;  %v3181_v54 = vadd.f32 %v3002_v51, %v2904_v14  ;;  %v1182_v55 = vpop.f32.mrb[5].mxu0 }
 0x14a   :  { %v1226_v57 = vmax.f32 %v1218_v50, 0.0  ;;  %v3182_v58 = vadd.f32 %v1182_v55, %v158_v17 }
 0x14b   :  { %v1233_v60 = vmax.f32 %v1225_v52, %v1227_v53  ;;  %v1221_v63 = vadd.f32 %v3181_v54, %v4009_v42 }
 0x14c   :  { %v1232_v61 = vmax.f32 %v1224_v56, %v1226_v57  ;;  %v3005_v62 = vpop.f32.mrb[6].mxu0  ;;  %v1220_v3 = vadd.f32 %v3182_v58, %v4009_v42 }
 0x14d   :  { %v3183_v0 = vadd.f32 %v3005_v62, %v2907_v19  ;;  %v1192_v1 = vpop.f32.mrb[7].mxu0  ;;  %v1229_v8 = vmax.f32 %v1221_v63, 0.0 }
 0x14e   :  { %v1234_v2 = vmax.f32 %v1232_v61, %v1233_v60  ;;  %v3184_v4 = vadd.f32 %v1192_v1, %v168_v22  ;;  %v1228_v10 = vmax.f32 %v1220_v3, 0.0  ;;  %v2418_v22 = vadd.s32 32, %v2414_v12 }
 0x14f   :  { %v1223_v6 = vadd.f32 %v3183_v0, %v4009_v42 }
 0x150   :  { %v1222_v7 = vadd.f32 %v3184_v4, %v4009_v42  ;;  %v1235_v16 = vrot.slane %v1234_v2, 4  ;;  %vm2427_vm3 = vcmp.le.s32.totalorder %v2418_v22, %v2731_v25 }
 0x151   :  { %v1231_v9 = vmax.f32 %v1223_v6, 0.0 }
 0x152   :  { %v1230_v11 = vmax.f32 %v1222_v7, 0.0  ;;  %v1236_v28 = vmax.f32 %v1234_v2, %v1235_v16 }
 0x153   :  { %v1242_v14 = vmax.f32 %v1229_v8, %v1231_v9 }
 0x154   :  { %v1241_v17 = vmax.f32 %v1228_v10, %v1230_v11  ;;  %v3108_v18 = vpop.f32.mrb[6].mxu1  ;;  %v1237_v36 = vrot.slane %v1236_v28, 2 }
 0x155   :  { %v2397_v19 = vadd.f32 %v3108_v18, %v4009_v42  ;;  %v2349_v20 = vpop.f32.mrb[7].mxu1 }
 0x156   :  { %v1243_v21 = vmax.f32 %v1241_v17, %v1242_v14  ;;  %v2396_v23 = vadd.f32 %v4009_v42, %v2349_v20  ;;  %v1238_v50 = vmax.f32 %v1236_v28, %v1237_v36 }
 0x157   :  { %v2405_v30 = vmax.f32 %v2397_v19, 0.0 }
 0x158   :  { %v3111_v29 = vpop.f32.mrb[8].mxu1  ;;  %v2404_v33 = vmax.f32 %v2396_v23, 0.0  ;;  %v1244_v39 = vrot.slane %v1243_v21, 4  ;;  %v1239_v61 = vrot.slane %v1238_v50, 1 }
 0x159   :  { %v2399_v31 = vadd.f32 %v3111_v29, %v4009_v42  ;;  %v2359_v32 = vpop.f32.mrb[9].mxu1  ;;  %v2439_v40 = vsel %vm2427_vm3, %v2405_v30, 0.0 }
 0x15a   :  { %v2398_v34 = vadd.f32 %v4009_v42, %v2359_v32  ;;  %v2438_v45 = vsel %vm2426_vm5, %v2404_v33, 0.0  ;;  %v1245_v52 = vmax.f32 %v1243_v21, %v1244_v39  ;;  %v1240_v10 = vmax.f32 %v1238_v50, %v1239_v61 }
 0x15b   :  { %v2407_v35 = vmax.f32 %v2399_v31, 0.0 }
 0x15c   :  { %v2406_v37 = vmax.f32 %v2398_v34, 0.0  ;;  %v3114_v38 = vpop.f32.mrb[10].mxu1  ;;  %v1246_v63 = vrot.slane %v1245_v52, 2  ;;  %v1250_v16 = vmax.f32 %v1240_v10, 0.0 }
 0x15d   :  { %v2441_v41 = vsel %vm2429_vm4, %v2407_v35, 0.0  ;;  %v2401_v43 = vadd.f32 %v3114_v38, %v4009_v42  ;;  %v2369_v44 = vpop.f32.mrb[11].mxu1 }
 0x15e   :  { %v2447_v46 = vmax.f32 %v2439_v40, %v2441_v41  ;;  %v2440_v47 = vsel %vm2428_vm6, %v2406_v37, 0.0  ;;  %v2400_v48 = vadd.f32 %v4009_v42, %v2369_v44  ;;  %v1247_v8 = vmax.f32 %v1245_v52, %v1246_v63 }
 0x15f   :  { %v2446_v49 = vmax.f32 %v2438_v45, %v2440_v47  ;;  %v2409_v54 = vmax.f32 %v2401_v43, 0.0 }
 0x160   :  { %v3117_v51 = vpop.f32.mrb[12].mxu1  ;;  %v2408_v57 = vmax.f32 %v2400_v48, 0.0  ;;  %v1248_v13 = vrot.slane %v1247_v8, 1 }
 0x161   :  { %v2448_v53 = vmax.f32 %v2446_v49, %v2447_v46  ;;  %v2403_v55 = vadd.f32 %v3117_v51, %v4009_v42  ;;  %v2379_v56 = vpop.f32.mrb[13].mxu1  ;;  %v2443_v1 = vsel %vm2427_vm3, %v2409_v54, 0.0 }
 0x162   :  { %v2402_v58 = vadd.f32 %v4009_v42, %v2379_v56  ;;  %v2442_v3 = vsel %vm2426_vm5, %v2408_v57, 0.0  ;;  %v1249_v20 = vmax.f32 %v1247_v8, %v1248_v13 }
 0x163   :  { %v2449_v59 = vrot.slane %v2448_v53, 4  ;;  %v2411_v60 = vmax.f32 %v2403_v55, 0.0 }
 0x164   :  { %v2410_v62 = vmax.f32 %v2402_v58, 0.0  ;;  %v1251_v23 = vmax.f32 %v1249_v20, 0.0 }
 0x165   :  { %v2450_v0 = vmax.f32 %v2448_v53, %v2449_v59  ;;  %v2445_v2 = vsel %vm2429_vm4, %v2411_v60, 0.0 }
 0x166   :  { %v2456_v4 = vmax.f32 %v2443_v1, %v2445_v2  ;;  %v2444_v5 = vsel %vm2428_vm6, %v2410_v62, 0.0 }
 0x167   :  { %v2451_v6 = vrot.slane %v2450_v0, 2  ;;  %v2455_v7 = vmax.f32 %v2442_v3, %v2444_v5 }
 0x169   :  { %v2452_v9 = vmax.f32 %v2450_v0, %v2451_v6  ;;  %v2457_v42 = vmax.f32 %v2455_v7, %v2456_v4 }
 0x16b   :  { %v2453_v11 = vrot.slane %v2452_v9, 1  ;;  %v2458_v12 = vrot.slane %v2457_v42, 4 }
 0x16d   :  { %v2454_v14 = vmax.f32 %v2452_v9, %v2453_v11  ;;  %v2459_v15 = vmax.f32 %v2457_v42, %v2458_v12 }
 0x16f   :  { %v2460_v17 = vrot.slane %v2459_v15, 2  ;;  %v2464_v18 = vmax.f32 %v1250_v16, %v2454_v14 }
 0x171   :  { %v2461_v19 = vmax.f32 %v2459_v15, %v2460_v17 }
 0x173   :  { %v2462_v21 = vrot.slane %v2461_v19, 1 }
 0x175   :  { %v2463_v22 = vmax.f32 %v2461_v19, %v2462_v21 }
 0x177   :  { %v2465_v24 = vmax.f32 %v1251_v23, %v2463_v22 }
 0x179   :  { %v2492_v25 = vsel %vm2491_vm7, %v2465_v24, %v2464_v18 }
 0x17a   :  { %3151 = vmatmul.mubr.f32.vlgmr.msra.gmra.mrb[8].mxu0 %v2492_v25 }
 0x24d   :  { %v2560_v27 = vpop.f32.mrb[8].mxu0 }
 0x24e   :  { %v2561_v28 = vadd.f32 %v2732_v26, %v2560_v27  ;;  %v3152_v29 = vpop.f32.mrb[9].mxu0 }
 0x250   :  { %2564 = vst [vmem:[#allocation2] sm:$0x3] %v2561_v28 }
 0x251   :  { %3306 = shalt.err (!%p3303_p4)
}
 0x252   :  { %s3307_s13 = scalar_lea.hbm %s4059_s6, 32 }
 0x253   :  { %p3308_p5 = scmp.ne.s32.totalorder %s4059_s6, %s3307_s13  ;;  %p3311_p6 = scmp.lt.u32.totalorder %s3307_s13, %s4059_s6 }
 0x255   :  { %p3313_p7 = pnand %p3311_p6, %p3308_p5 }
 0x257   :  { %3316 = shalt.err (!%p3313_p7)
}
 0x258   :  { %2574 = dma.vmem_to_hbm [thread:$0]  %s2572_s9, 32, %s4059_s6, [#allocation3]  }
 0x259   :  { %3317 = dma.done.wait [#allocation3], 32  }
 0x25a   :  { %3318 = vsyncadd [#allocation3], 4294967264 }
 0x25b   :  { %2578 = vsyncpa [#allocation3], 1 }

</bundles_post_ra>
